<compile_context>
chip_gen: v5e
topology: v5e:2x2
jax: 0.10.0
libtpu: 0.0.40
codegen_flags: <defaults>
</compile_context>

<pallas_src>
import math

import jax
import jax.numpy as jnp
from jax import lax
from jax.experimental import pallas as pl
from jax.experimental.pallas import tpu as pltpu

# --- model config (small, consistent with the module's __init__) ---
EMB_DIM = 64
N_HEADS = 4
N_KV_GROUPS = 2
HEAD_DIM = EMB_DIM // N_HEADS          # 16
GROUP_SIZE = N_HEADS // N_KV_GROUPS    # 2
KV_DIM = N_KV_GROUPS * HEAD_DIM        # 32
HIDDEN_DIM = 128
CONTEXT_LEN = 8
SEQ_LEN = 8
BATCH = 2
EPS = 1e-5
ROPE_THETA = 10000.0
NEG_MASK = -1e30

QKV_WIDTH = 2 * EMB_DIM + 3 * KV_DIM   # 224 (qc | qs | kc | ks | v)
QKV_PAD = 256 - QKV_WIDTH              # pad fused weight to 256 lanes


# ---------------- in-kernel helpers ----------------
def _rmsnorm(x, scale):
    var = jnp.mean(x * x, axis=-1, keepdims=True)
    return x * lax.rsqrt(var + EPS) * scale


# ---------------- the Pallas kernel ----------------
def transformer_block_kernel(x_ref, rope_ref, mask_ref,
                             wqkv_ref, wo_ref, w12_ref, w3_ref,
                             n1_ref, n2_ref, out_ref):
    x = x_ref[...]                                   # (B*S, E)

    # ---------- attention branch ----------
    xn = _rmsnorm(x, n1_ref[...])                    # (B*S, E)

    # One fused projection: [q_cos | q_sin | k_cos | k_sin | v | pad] (B*S, 256),
    # then one elementwise rope multiply (cos|sin|cos|sin|1|1) and lane slices.
    proj = jnp.dot(xn, wqkv_ref[...], preferred_element_type=jnp.float32)
    proj = proj * rope_ref[...]
    q = proj[:, 0:EMB_DIM] + proj[:, EMB_DIM:2 * EMB_DIM]              # (B*S, E), scaled
    k = (proj[:, 2 * EMB_DIM:2 * EMB_DIM + KV_DIM]
         + proj[:, 2 * EMB_DIM + KV_DIM:2 * EMB_DIM + 2 * KV_DIM])     # (B*S, KV)
    v = proj[:, 2 * EMB_DIM + 2 * KV_DIM:2 * EMB_DIM + 3 * KV_DIM]     # (B*S, KV)

    mask = mask_ref[...]                             # (B*S, B*S) block-diag causal

    ctx_parts = []
    for h in range(N_HEADS):                         # static loop over heads
        g = h // GROUP_SIZE                          # repeat_interleave mapping
        q_h = q[:, h * HEAD_DIM:(h + 1) * HEAD_DIM]  # (B*S, hd)
        k_g = k[:, g * HEAD_DIM:(g + 1) * HEAD_DIM]
        v_g = v[:, g * HEAD_DIM:(g + 1) * HEAD_DIM]
        # scores over ALL batch rows at once (already scaled); block-diag mask.
        s = lax.dot_general(q_h, k_g, (((1,), (1,)), ((), ())),
                            preferred_element_type=jnp.float32) + mask
        s = s - jnp.max(s, axis=-1, keepdims=True)
        p = jnp.exp(s)
        p = p * pl.reciprocal(jnp.sum(p, axis=-1, keepdims=True), approx=True)
        ctx_parts.append(jnp.dot(p, v_g, preferred_element_type=jnp.float32))

    ctx = jnp.concatenate(ctx_parts, axis=1)         # (B*S, E) lane concat
    attn_out = jnp.dot(ctx, wo_ref[...], preferred_element_type=jnp.float32)
    x1 = x + attn_out

    # ---------- feed-forward branch ----------
    xn2 = _rmsnorm(x1, n2_ref[...])
    h12 = jnp.dot(xn2, w12_ref[...], preferred_element_type=jnp.float32)  # (B*S, 256)
    h1 = h12[:, :HIDDEN_DIM]                          # split at lane 128 (free)
    h2 = h12[:, HIDDEN_DIM:]
    hidden = h1 * jax.nn.sigmoid(h1) * h2             # silu(h1) * h2
    ff = jnp.dot(hidden, w3_ref[...], preferred_element_type=jnp.float32)

    out = x1 + ff                                     # (B*S, E)

    # Lane-dense store: (S, B*E) = (8, 128), one full vreg, unmasked vst.
    out_ref[...] = jnp.concatenate(
        [out[b * SEQ_LEN:(b + 1) * SEQ_LEN, :] for b in range(BATCH)],
        axis=1).astype(out_ref.dtype)


# ---------------- one-time host-side parameter preparation ----------------
def _fold_rope_sin(w, head_dim):
    """Return w @ P_rot exactly (P_rot = signed rotate-half permutation per head),
    implemented as a column permutation/negation so no precision is lost."""
    half = head_dim // 2
    cols = []
    for base in range(0, w.shape[1], head_dim):
        first = w[:, base:base + half]
        second = w[:, base + half:base + head_dim]
        cols.append(-second)   # columns [base, base+half)     <- -x2
        cols.append(first)     # columns [base+half, base+hd)  <- +x1
    return jnp.concatenate(cols, axis=1)


def prepare_block_inputs(params, cos, sin, batch, seq_len):
    """All weight folding / tiling / mask construction, done ONCE at init."""
    scale = 1.0 / math.sqrt(HEAD_DIM)

    # RoPE (linear) folded into a cos-path and sin-path weight; attention scale
    # folded into the query weights.
    wq_c = params["wq"] * scale
    wq_s = _fold_rope_sin(params["wq"], HEAD_DIM) * scale
    wk_c = params["wk"]
    wk_s = _fold_rope_sin(params["wk"], HEAD_DIM)
    pad = jnp.zeros((EMB_DIM, QKV_PAD), jnp.float32)
    w_qkv = jnp.concatenate([wq_c, wq_s, wk_c, wk_s, params["wv"], pad], axis=1)  # (64,256)

    # Single (B*S, 256) rope multiplier: cos_q | sin_q | cos_k | sin_k | 1 | 1.
    cos_s, sin_s = cos[:seq_len], sin[:seq_len]                    # (S, hd)
    cos_q = jnp.tile(cos_s, (batch, N_HEADS))                      # (B*S, E)
    sin_q = jnp.tile(sin_s, (batch, N_HEADS))
    cos_k = jnp.tile(cos_s, (batch, N_KV_GROUPS))                  # (B*S, KV)
    sin_k = jnp.tile(sin_s, (batch, N_KV_GROUPS))
    ones_v = jnp.ones((batch * seq_len, KV_DIM + QKV_PAD), jnp.float32)
    rope_mul = jnp.concatenate([cos_q, sin_q, cos_k, sin_k, ones_v], axis=1)  # (B*S,256)

    # Block-diagonal additive causal mask over the flattened (B*S, B*S) rows:
    # causal within each batch block, -1e30 across batches.  Every row keeps its
    # diagonal entry unmasked, so no row is fully masked.
    rows = jnp.arange(batch * seq_len)
    b_id = rows // seq_len
    pos = rows % seq_len
    allowed = (b_id[:, None] == b_id[None, :]) & (pos[None, :] <= pos[:, None])
    mask_bd = jnp.where(allowed, 0.0, NEG_MASK).astype(jnp.float32)

    # Fused FFN up-projection: w1 | w2 -> (64, 256), split in-kernel at lane 128.
    w12 = jnp.concatenate([params["w1"], params["w2"]], axis=1)

    return {
        "rope_mul": rope_mul, "mask": mask_bd, "w_qkv": w_qkv,
        "wo": params["wo"], "w12": w12, "w3": params["w3"],
        "n1": params["n1"], "n2": params["n2"],
    }


# ---------------- per-call wrapper ----------------
def transformer_block(x, prepped):
    B, S, E = x.shape
    x2d = x.reshape(B * S, E)

    vmem_spec = pl.BlockSpec(memory_space=pltpu.MemorySpace.VMEM)
    out_slab = pl.pallas_call(
        transformer_block_kernel,
        out_shape=jax.ShapeDtypeStruct((S, B * E), jnp.float32),
        in_specs=[vmem_spec] * 9,
        out_specs=vmem_spec,
    )(x2d, prepped["rope_mul"], prepped["mask"], prepped["w_qkv"],
      prepped["wo"], prepped["w12"], prepped["w3"],
      prepped["n1"], prepped["n2"])

    # (S, B*E) lane-dense slab -> (B, S, E)
    return out_slab.reshape(S, B, E).transpose(1, 0, 2)


# ---------------- pure-JAX reference (mirrors the torch module) ----------------
def reference_block(x, cos, sin, p):
    def rmsnorm(v, w):
        return v * lax.rsqrt(jnp.mean(v * v, -1, keepdims=True) + EPS) * w[0]

    def apply_rope(v):  # v: (B, H, S, hd)
        half = HEAD_DIM // 2
        v1, v2 = v[..., :half], v[..., half:]
        rot = jnp.concatenate([-v2, v1], axis=-1)
        c = cos[None, None, :, :]
        s = sin[None, None, :, :]
        return v * c + rot * s

    B, S, E = x.shape
    xn = rmsnorm(x, p["n1"])
    q = (xn @ p["wq"]).reshape(B, S, N_HEADS, HEAD_DIM).transpose(0, 2, 1, 3)
    k = (xn @ p["wk"]).reshape(B, S, N_KV_GROUPS, HEAD_DIM).transpose(0, 2, 1, 3)
    v = (xn @ p["wv"]).reshape(B, S, N_KV_GROUPS, HEAD_DIM).transpose(0, 2, 1, 3)
    q, k = apply_rope(q), apply_rope(k)
    k = jnp.repeat(k, GROUP_SIZE, axis=1)
    v = jnp.repeat(v, GROUP_SIZE, axis=1)
    scores = jnp.einsum("bhqd,bhkd->bhqk", q, k)
    mask = jnp.triu(jnp.ones((S, S), dtype=bool), k=1)
    scores = jnp.where(mask[None, None], -jnp.inf, scores)
    attn = jax.nn.softmax(scores / math.sqrt(HEAD_DIM), axis=-1)
    ctx = jnp.einsum("bhqk,bhkd->bqhd", attn, v).reshape(B, S, E)
    x1 = x + ctx @ p["wo"]
    xn2 = rmsnorm(x1, p["n2"])
    h1 = xn2 @ p["w1"]
    h2 = xn2 @ p["w2"]
    ff = (jax.nn.silu(h1) * h2) @ p["w3"]
    return x1 + ff


# ---------------- parameter / input construction ----------------
def make_params(key):
    ks = jax.random.split(key, 10)
    scale = 0.05
    return {
        "wq": scale * jax.random.normal(ks[0], (EMB_DIM, EMB_DIM), jnp.float32),
        "wk": scale * jax.random.normal(ks[1], (EMB_DIM, KV_DIM), jnp.float32),
        "wv": scale * jax.random.normal(ks[2], (EMB_DIM, KV_DIM), jnp.float32),
        "wo": scale * jax.random.normal(ks[3], (EMB_DIM, EMB_DIM), jnp.float32),
        "w1": scale * jax.random.normal(ks[4], (EMB_DIM, HIDDEN_DIM), jnp.float32),
        "w2": scale * jax.random.normal(ks[5], (EMB_DIM, HIDDEN_DIM), jnp.float32),
        "w3": scale * jax.random.normal(ks[6], (HIDDEN_DIM, EMB_DIM), jnp.float32),
        "n1": 1.0 + 0.1 * jax.random.normal(ks[7], (1, EMB_DIM), jnp.float32),
        "n2": 1.0 + 0.1 * jax.random.normal(ks[8], (1, EMB_DIM), jnp.float32),
    }


def make_rope(context_len, head_dim, theta=ROPE_THETA):
    inv_freq = 1.0 / (theta ** (jnp.arange(0, head_dim, 2, dtype=jnp.float32) / head_dim))
    pos = jnp.arange(context_len, dtype=jnp.float32)
    angles = pos[:, None] * inv_freq[None, :]            # (ctx, hd/2)
    angles = jnp.concatenate([angles, angles], axis=-1)  # (ctx, hd)
    return jnp.cos(angles), jnp.sin(angles)


if __name__ == "__main__":
    # TODO(synk): the use_cache=True KV-cache path of the torch module is stateful
    # and is not implemented; this kernel covers the use_cache=False forward.
    key = jax.random.PRNGKey(0)
    k_p, k_x = jax.random.split(key)
    params = make_params(k_p)
    cos, sin = make_rope(CONTEXT_LEN, HEAD_DIM)
    x = jax.random.normal(k_x, (BATCH, SEQ_LEN, EMB_DIM), jnp.float32)

    # One-time parameter prep (all folding / tiling / mask construction).
    prepped = {k: jax.block_until_ready(v)
               for k, v in prepare_block_inputs(params, cos, sin, BATCH, SEQ_LEN).items()}

    out = jax.block_until_ready(transformer_block(x, prepped))
    ref = jax.block_until_ready(reference_block(x, cos, sin, params))

    assert out.shape == (BATCH, SEQ_LEN, EMB_DIM)
    assert jnp.allclose(out, ref, rtol=1e-3, atol=1e-3), (
        f"max abs diff {jnp.max(jnp.abs(out - ref))}")

    print("KERNEL_OK")
</pallas_src>

<mosaic_0001>
module attributes {stable_mosaic.version = 11 : i64} {
  func.func @transformer_block_kernel(%arg0: memref<16x64xf32, #tpu.memory_space<vmem>>, %arg1: memref<16x256xf32, #tpu.memory_space<vmem>>, %arg2: memref<16x16xf32, #tpu.memory_space<vmem>>, %arg3: memref<64x256xf32, #tpu.memory_space<vmem>>, %arg4: memref<64x64xf32, #tpu.memory_space<vmem>>, %arg5: memref<64x256xf32, #tpu.memory_space<vmem>>, %arg6: memref<128x64xf32, #tpu.memory_space<vmem>>, %arg7: memref<1x64xf32, #tpu.memory_space<vmem>>, %arg8: memref<1x64xf32, #tpu.memory_space<vmem>>, %arg9: memref<8x128xf32, #tpu.memory_space<vmem>>) attributes {dimension_semantics = [], scalar_prefetch = 0 : i64, scratch_operands = 0 : i64, tpu.core_type = #tpu.core_type<tc>} {
    %c0 = arith.constant 0 : index
    %c0_0 = arith.constant 0 : index
    %0 = vector.load %arg0[%c0, %c0_0] : memref<16x64xf32, #tpu.memory_space<vmem>>, vector<16x64xf32>
    %c0_1 = arith.constant 0 : index
    %c0_2 = arith.constant 0 : index
    %1 = vector.load %arg7[%c0_1, %c0_2] : memref<1x64xf32, #tpu.memory_space<vmem>>, vector<1x64xf32>
    %2 = arith.mulf %0, %0 : vector<16x64xf32>
    %cst = arith.constant dense<0.000000e+00> : vector<16xf32>
    %3 = vector.multi_reduction <add>, %2, %cst [1] : vector<16x64xf32> to vector<16xf32>
    %4 = vector.shape_cast %3 : vector<16xf32> to vector<16x1xf32>
    %cst_3 = arith.constant 6.400000e+01 : f32
    %5 = vector.broadcast %cst_3 : f32 to vector<16x1xf32>
    %6 = arith.divf %4, %5 : vector<16x1xf32>
    %cst_4 = arith.constant 9.99999974E-6 : f32
    %7 = vector.broadcast %cst_4 : f32 to vector<16x1xf32>
    %8 = arith.addf %6, %7 : vector<16x1xf32>
    %9 = math.rsqrt %8 : vector<16x1xf32>
    %10 = vector.broadcast %9 : vector<16x1xf32> to vector<16x64xf32>
    %11 = arith.mulf %0, %10 : vector<16x64xf32>
    %12 = vector.broadcast %1 : vector<1x64xf32> to vector<16x64xf32>
    %13 = arith.mulf %11, %12 : vector<16x64xf32>
    %c0_5 = arith.constant 0 : index
    %c0_6 = arith.constant 0 : index
    %14 = vector.load %arg3[%c0_5, %c0_6] : memref<64x256xf32, #tpu.memory_space<vmem>>, vector<64x256xf32>
    %cst_7 = arith.constant dense<0.000000e+00> : vector<16x256xf32>
    %15 = tpu.matmul %13, %14, %cst_7 {dimension_numbers = #tpu.dot_dimension_numbers<[1], [0], [0], [1], [0, 0, 1, 1], [], []>} : vector<16x64xf32>, vector<64x256xf32>, vector<16x256xf32> -> vector<16x256xf32>
    %c0_8 = arith.constant 0 : index
    %c0_9 = arith.constant 0 : index
    %16 = vector.load %arg1[%c0_8, %c0_9] : memref<16x256xf32, #tpu.memory_space<vmem>>, vector<16x256xf32>
    %17 = arith.mulf %15, %16 : vector<16x256xf32>
    %18 = vector.extract_strided_slice %17 {offsets = [0, 0], sizes = [16, 64], strides = [1, 1]} : vector<16x256xf32> to vector<16x64xf32>
    %19 = vector.extract_strided_slice %17 {offsets = [0, 64], sizes = [16, 64], strides = [1, 1]} : vector<16x256xf32> to vector<16x64xf32>
    %20 = arith.addf %18, %19 : vector<16x64xf32>
    %21 = vector.extract_strided_slice %17 {offsets = [0, 128], sizes = [16, 32], strides = [1, 1]} : vector<16x256xf32> to vector<16x32xf32>
    %22 = vector.extract_strided_slice %17 {offsets = [0, 160], sizes = [16, 32], strides = [1, 1]} : vector<16x256xf32> to vector<16x32xf32>
    %23 = arith.addf %21, %22 : vector<16x32xf32>
    %24 = vector.extract_strided_slice %17 {offsets = [0, 192], sizes = [16, 32], strides = [1, 1]} : vector<16x256xf32> to vector<16x32xf32>
    %c0_10 = arith.constant 0 : index
    %c0_11 = arith.constant 0 : index
    %25 = vector.load %arg2[%c0_10, %c0_11] : memref<16x16xf32, #tpu.memory_space<vmem>>, vector<16x16xf32>
    %26 = vector.extract_strided_slice %20 {offsets = [0, 0], sizes = [16, 16], strides = [1, 1]} : vector<16x64xf32> to vector<16x16xf32>
    %27 = vector.extract_strided_slice %23 {offsets = [0, 0], sizes = [16, 16], strides = [1, 1]} : vector<16x32xf32> to vector<16x16xf32>
    %28 = vector.extract_strided_slice %24 {offsets = [0, 0], sizes = [16, 16], strides = [1, 1]} : vector<16x32xf32> to vector<16x16xf32>
    %cst_12 = arith.constant dense<0.000000e+00> : vector<16x16xf32>
    %29 = tpu.matmul %26, %27, %cst_12 {dimension_numbers = #tpu.dot_dimension_numbers<[1], [1], [0], [0], [0, 0, 1, 0], [], []>} : vector<16x16xf32>, vector<16x16xf32>, vector<16x16xf32> -> vector<16x16xf32>
    %30 = arith.addf %29, %25 : vector<16x16xf32>
    %cst_13 = arith.constant dense<0xFF800000> : vector<16xf32>
    %31 = vector.multi_reduction <maximumf>, %30, %cst_13 [1] : vector<16x16xf32> to vector<16xf32>
    %32 = vector.shape_cast %31 : vector<16xf32> to vector<16x1xf32>
    %33 = vector.broadcast %32 : vector<16x1xf32> to vector<16x16xf32>
    %34 = arith.subf %30, %33 : vector<16x16xf32>
    %35 = math.exp %34 : vector<16x16xf32>
    %cst_14 = arith.constant dense<0.000000e+00> : vector<16xf32>
    %36 = vector.multi_reduction <add>, %35, %cst_14 [1] : vector<16x16xf32> to vector<16xf32>
    %37 = vector.shape_cast %36 : vector<16xf32> to vector<16x1xf32>
    %38 = tpu.reciprocal %37 {approx = true} : vector<16x1xf32> -> vector<16x1xf32>
    %39 = vector.broadcast %38 : vector<16x1xf32> to vector<16x16xf32>
    %40 = arith.mulf %35, %39 : vector<16x16xf32>
    %cst_15 = arith.constant dense<0.000000e+00> : vector<16x16xf32>
    %41 = tpu.matmul %40, %28, %cst_15 {dimension_numbers = #tpu.dot_dimension_numbers<[1], [0], [0], [1], [0, 0, 1, 1], [], []>} : vector<16x16xf32>, vector<16x16xf32>, vector<16x16xf32> -> vector<16x16xf32>
    %42 = vector.extract_strided_slice %20 {offsets = [0, 16], sizes = [16, 16], strides = [1, 1]} : vector<16x64xf32> to vector<16x16xf32>
    %43 = vector.extract_strided_slice %23 {offsets = [0, 0], sizes = [16, 16], strides = [1, 1]} : vector<16x32xf32> to vector<16x16xf32>
    %44 = vector.extract_strided_slice %24 {offsets = [0, 0], sizes = [16, 16], strides = [1, 1]} : vector<16x32xf32> to vector<16x16xf32>
    %cst_16 = arith.constant dense<0.000000e+00> : vector<16x16xf32>
    %45 = tpu.matmul %42, %43, %cst_16 {dimension_numbers = #tpu.dot_dimension_numbers<[1], [1], [0], [0], [0, 0, 1, 0], [], []>} : vector<16x16xf32>, vector<16x16xf32>, vector<16x16xf32> -> vector<16x16xf32>
    %46 = arith.addf %45, %25 : vector<16x16xf32>
    %cst_17 = arith.constant dense<0xFF800000> : vector<16xf32>
    %47 = vector.multi_reduction <maximumf>, %46, %cst_17 [1] : vector<16x16xf32> to vector<16xf32>
    %48 = vector.shape_cast %47 : vector<16xf32> to vector<16x1xf32>
    %49 = vector.broadcast %48 : vector<16x1xf32> to vector<16x16xf32>
    %50 = arith.subf %46, %49 : vector<16x16xf32>
    %51 = math.exp %50 : vector<16x16xf32>
    %cst_18 = arith.constant dense<0.000000e+00> : vector<16xf32>
    %52 = vector.multi_reduction <add>, %51, %cst_18 [1] : vector<16x16xf32> to vector<16xf32>
    %53 = vector.shape_cast %52 : vector<16xf32> to vector<16x1xf32>
    %54 = tpu.reciprocal %53 {approx = true} : vector<16x1xf32> -> vector<16x1xf32>
    %55 = vector.broadcast %54 : vector<16x1xf32> to vector<16x16xf32>
    %56 = arith.mulf %51, %55 : vector<16x16xf32>
    %cst_19 = arith.constant dense<0.000000e+00> : vector<16x16xf32>
    %57 = tpu.matmul %56, %44, %cst_19 {dimension_numbers = #tpu.dot_dimension_numbers<[1], [0], [0], [1], [0, 0, 1, 1], [], []>} : vector<16x16xf32>, vector<16x16xf32>, vector<16x16xf32> -> vector<16x16xf32>
    %58 = vector.extract_strided_slice %20 {offsets = [0, 32], sizes = [16, 16], strides = [1, 1]} : vector<16x64xf32> to vector<16x16xf32>
    %59 = vector.extract_strided_slice %23 {offsets = [0, 16], sizes = [16, 16], strides = [1, 1]} : vector<16x32xf32> to vector<16x16xf32>
    %60 = vector.extract_strided_slice %24 {offsets = [0, 16], sizes = [16, 16], strides = [1, 1]} : vector<16x32xf32> to vector<16x16xf32>
    %cst_20 = arith.constant dense<0.000000e+00> : vector<16x16xf32>
    %61 = tpu.matmul %58, %59, %cst_20 {dimension_numbers = #tpu.dot_dimension_numbers<[1], [1], [0], [0], [0, 0, 1, 0], [], []>} : vector<16x16xf32>, vector<16x16xf32>, vector<16x16xf32> -> vector<16x16xf32>
    %62 = arith.addf %61, %25 : vector<16x16xf32>
    %cst_21 = arith.constant dense<0xFF800000> : vector<16xf32>
    %63 = vector.multi_reduction <maximumf>, %62, %cst_21 [1] : vector<16x16xf32> to vector<16xf32>
    %64 = vector.shape_cast %63 : vector<16xf32> to vector<16x1xf32>
    %65 = vector.broadcast %64 : vector<16x1xf32> to vector<16x16xf32>
    %66 = arith.subf %62, %65 : vector<16x16xf32>
    %67 = math.exp %66 : vector<16x16xf32>
    %cst_22 = arith.constant dense<0.000000e+00> : vector<16xf32>
    %68 = vector.multi_reduction <add>, %67, %cst_22 [1] : vector<16x16xf32> to vector<16xf32>
    %69 = vector.shape_cast %68 : vector<16xf32> to vector<16x1xf32>
    %70 = tpu.reciprocal %69 {approx = true} : vector<16x1xf32> -> vector<16x1xf32>
    %71 = vector.broadcast %70 : vector<16x1xf32> to vector<16x16xf32>
    %72 = arith.mulf %67, %71 : vector<16x16xf32>
    %cst_23 = arith.constant dense<0.000000e+00> : vector<16x16xf32>
    %73 = tpu.matmul %72, %60, %cst_23 {dimension_numbers = #tpu.dot_dimension_numbers<[1], [0], [0], [1], [0, 0, 1, 1], [], []>} : vector<16x16xf32>, vector<16x16xf32>, vector<16x16xf32> -> vector<16x16xf32>
    %74 = vector.extract_strided_slice %20 {offsets = [0, 48], sizes = [16, 16], strides = [1, 1]} : vector<16x64xf32> to vector<16x16xf32>
    %75 = vector.extract_strided_slice %23 {offsets = [0, 16], sizes = [16, 16], strides = [1, 1]} : vector<16x32xf32> to vector<16x16xf32>
    %76 = vector.extract_strided_slice %24 {offsets = [0, 16], sizes = [16, 16], strides = [1, 1]} : vector<16x32xf32> to vector<16x16xf32>
    %cst_24 = arith.constant dense<0.000000e+00> : vector<16x16xf32>
    %77 = tpu.matmul %74, %75, %cst_24 {dimension_numbers = #tpu.dot_dimension_numbers<[1], [1], [0], [0], [0, 0, 1, 0], [], []>} : vector<16x16xf32>, vector<16x16xf32>, vector<16x16xf32> -> vector<16x16xf32>
    %78 = arith.addf %77, %25 : vector<16x16xf32>
    %cst_25 = arith.constant dense<0xFF800000> : vector<16xf32>
    %79 = vector.multi_reduction <maximumf>, %78, %cst_25 [1] : vector<16x16xf32> to vector<16xf32>
    %80 = vector.shape_cast %79 : vector<16xf32> to vector<16x1xf32>
    %81 = vector.broadcast %80 : vector<16x1xf32> to vector<16x16xf32>
    %82 = arith.subf %78, %81 : vector<16x16xf32>
    %83 = math.exp %82 : vector<16x16xf32>
    %cst_26 = arith.constant dense<0.000000e+00> : vector<16xf32>
    %84 = vector.multi_reduction <add>, %83, %cst_26 [1] : vector<16x16xf32> to vector<16xf32>
    %85 = vector.shape_cast %84 : vector<16xf32> to vector<16x1xf32>
    %86 = tpu.reciprocal %85 {approx = true} : vector<16x1xf32> -> vector<16x1xf32>
    %87 = vector.broadcast %86 : vector<16x1xf32> to vector<16x16xf32>
    %88 = arith.mulf %83, %87 : vector<16x16xf32>
    %cst_27 = arith.constant dense<0.000000e+00> : vector<16x16xf32>
    %89 = tpu.matmul %88, %76, %cst_27 {dimension_numbers = #tpu.dot_dimension_numbers<[1], [0], [0], [1], [0, 0, 1, 1], [], []>} : vector<16x16xf32>, vector<16x16xf32>, vector<16x16xf32> -> vector<16x16xf32>
    %90 = tpu.concatenate %41, %57, %73, %89 in 1 : vector<16x16xf32>, vector<16x16xf32>, vector<16x16xf32>, vector<16x16xf32> -> vector<16x64xf32>
    %c0_28 = arith.constant 0 : index
    %c0_29 = arith.constant 0 : index
    %91 = vector.load %arg4[%c0_28, %c0_29] : memref<64x64xf32, #tpu.memory_space<vmem>>, vector<64x64xf32>
    %cst_30 = arith.constant dense<0.000000e+00> : vector<16x64xf32>
    %92 = tpu.matmul %90, %91, %cst_30 {dimension_numbers = #tpu.dot_dimension_numbers<[1], [0], [0], [1], [0, 0, 1, 1], [], []>} : vector<16x64xf32>, vector<64x64xf32>, vector<16x64xf32> -> vector<16x64xf32>
    %93 = arith.addf %0, %92 : vector<16x64xf32>
    %c0_31 = arith.constant 0 : index
    %c0_32 = arith.constant 0 : index
    %94 = vector.load %arg8[%c0_31, %c0_32] : memref<1x64xf32, #tpu.memory_space<vmem>>, vector<1x64xf32>
    %95 = arith.mulf %93, %93 : vector<16x64xf32>
    %cst_33 = arith.constant dense<0.000000e+00> : vector<16xf32>
    %96 = vector.multi_reduction <add>, %95, %cst_33 [1] : vector<16x64xf32> to vector<16xf32>
    %97 = vector.shape_cast %96 : vector<16xf32> to vector<16x1xf32>
    %cst_34 = arith.constant 6.400000e+01 : f32
    %98 = vector.broadcast %cst_34 : f32 to vector<16x1xf32>
    %99 = arith.divf %97, %98 : vector<16x1xf32>
    %cst_35 = arith.constant 9.99999974E-6 : f32
    %100 = vector.broadcast %cst_35 : f32 to vector<16x1xf32>
    %101 = arith.addf %99, %100 : vector<16x1xf32>
    %102 = math.rsqrt %101 : vector<16x1xf32>
    %103 = vector.broadcast %102 : vector<16x1xf32> to vector<16x64xf32>
    %104 = arith.mulf %93, %103 : vector<16x64xf32>
    %105 = vector.broadcast %94 : vector<1x64xf32> to vector<16x64xf32>
    %106 = arith.mulf %104, %105 : vector<16x64xf32>
    %c0_36 = arith.constant 0 : index
    %c0_37 = arith.constant 0 : index
    %107 = vector.load %arg5[%c0_36, %c0_37] : memref<64x256xf32, #tpu.memory_space<vmem>>, vector<64x256xf32>
    %cst_38 = arith.constant dense<0.000000e+00> : vector<16x256xf32>
    %108 = tpu.matmul %106, %107, %cst_38 {dimension_numbers = #tpu.dot_dimension_numbers<[1], [0], [0], [1], [0, 0, 1, 1], [], []>} : vector<16x64xf32>, vector<64x256xf32>, vector<16x256xf32> -> vector<16x256xf32>
    %109 = vector.extract_strided_slice %108 {offsets = [0, 0], sizes = [16, 128], strides = [1, 1]} : vector<16x256xf32> to vector<16x128xf32>
    %110 = vector.extract_strided_slice %108 {offsets = [0, 128], sizes = [16, 128], strides = [1, 1]} : vector<16x256xf32> to vector<16x128xf32>
    %111 = arith.negf %109 : vector<16x128xf32>
    %112 = math.exp %111 : vector<16x128xf32>
    %cst_39 = arith.constant 1.000000e+00 : f32
    %113 = vector.broadcast %cst_39 : f32 to vector<16x128xf32>
    %114 = arith.addf %113, %112 : vector<16x128xf32>
    %115 = arith.divf %113, %114 : vector<16x128xf32>
    %116 = arith.mulf %109, %115 : vector<16x128xf32>
    %117 = arith.mulf %116, %110 : vector<16x128xf32>
    %c0_40 = arith.constant 0 : index
    %c0_41 = arith.constant 0 : index
    %118 = vector.load %arg6[%c0_40, %c0_41] : memref<128x64xf32, #tpu.memory_space<vmem>>, vector<128x64xf32>
    %cst_42 = arith.constant dense<0.000000e+00> : vector<16x64xf32>
    %119 = tpu.matmul %117, %118, %cst_42 {dimension_numbers = #tpu.dot_dimension_numbers<[1], [0], [0], [1], [0, 0, 1, 1], [], []>} : vector<16x128xf32>, vector<128x64xf32>, vector<16x64xf32> -> vector<16x64xf32>
    %120 = arith.addf %93, %119 : vector<16x64xf32>
    %121 = vector.extract_strided_slice %120 {offsets = [0, 0], sizes = [8, 64], strides = [1, 1]} : vector<16x64xf32> to vector<8x64xf32>
    %122 = vector.extract_strided_slice %120 {offsets = [8, 0], sizes = [8, 64], strides = [1, 1]} : vector<16x64xf32> to vector<8x64xf32>
    %123 = tpu.concatenate %121, %122 in 1 : vector<8x64xf32>, vector<8x64xf32> -> vector<8x128xf32>
    %c0_43 = arith.constant 0 : index
    %c0_44 = arith.constant 0 : index
    %124 = vector.load %arg9[%c0_43, %c0_44] : memref<8x128xf32, #tpu.memory_space<vmem>>, vector<8x128xf32>
    tpu.vector_store %arg9[%c0_43, %c0_44], %123 {strides = array<i32>} : memref<8x128xf32, #tpu.memory_space<vmem>>, vector<8x128xf32>,
    return
  }
}

</mosaic_0001>

<bundles_post_ra>
// kernel: tpu_custom_call.1
= control target key start
LH: loop header
LB: loop body
LE: loop exit
PB: predicated region body
PF: predicated region fallthrough
CT: control target
= control target key end

     0   :  { %14 = vsyncpa [#allocation3], 0  ;;  %s1465_s0 = inlined_call_operand.hbm [shape: f32[16,64], index: 0, kind: input, shape index: {}]   ;;  %s1466_s1 = inlined_call_operand.hbm [shape: f32[16,256], index: 1, kind: input, shape index: {}]   ;;  %s1467_s2 = inlined_call_operand.hbm [shape: f32[16,16], index: 2, kind: input, shape index: {}]   ;;  %s1468_s3 = inlined_call_operand.vmem [shape: f32[64,256], index: 3, kind: input, shape index: {}]   ;;  %s1469_s4 = inlined_call_operand.vmem [shape: f32[64,64], index: 4, kind: input, shape index: {}]   ;;  %s1470_s5 = inlined_call_operand.hbm [shape: f32[64,256], index: 5, kind: input, shape index: {}]   ;;  %s1471_s6 = inlined_call_operand.vmem [shape: f32[128,64], index: 6, kind: input, shape index: {}]   ;;  %s1472_s7 = inlined_call_operand.vmem [shape: f32[1,64], index: 7, kind: input, shape index: {}]   ;;  %s1473_s8 = inlined_call_operand.vmem [shape: f32[1,64], index: 8, kind: input, shape index: {}]   ;;  %s1474_s9 = inlined_call_operand.hbm [shape: f32[8,128], index: 9, kind: output, shape index: {}]  }
   0x1   :  { %15 = vsyncpa [#allocation6], 0 }
   0x2   :  { %16 = vsyncpa [#allocation9], 0  ;;  %s35_s11 = sshll.u32 %s1466_s1, 4  ;;  %s36_s11 = int_to_ptr.hbm [resolvable:$true] %s35_s11 }
   0x3   :  { %17 = vsyncpa [#allocation4], 0  ;;  %s1128_s12 = smov [#allocation5]   ;;  %s22_s16 = sshll.u32 %s1465_s0, 4  ;;  %s23_s16 = int_to_ptr.hbm [resolvable:$true] %s22_s16 }
   0x4   :  { %s37_s13 = sshll.u32 %s1128_s12, 4  ;;  %s1129_s17 = smov 256   ;;  %s38_s13 = int_to_ptr.vmem [resolvable:$true] %s37_s13 }
   0x5   :  { %s1130_s18 = smov 16   ;;  %s1131_s19 = smov [#allocation2]  }
   0x6   :  { %43 = dma.hbm_to_vmem [thread:$0]  %s36_s11, 512, %s38_s13, [#allocation6], %s1129_s17, %s1129_s17, %s1130_s18  }
   0x7   :  { %s24_s20 = sshll.u32 %s1131_s19, 4  ;;  %s1132_s21 = smov 128   ;;  %s25_s20 = int_to_ptr.vmem [resolvable:$true] %s24_s20 }
   0x8   :  { %s1133_s22 = smov 8   ;;  %s48_s24 = sshll.u32 %s1467_s2, 4  ;;  %s49_s24 = int_to_ptr.hbm [resolvable:$true] %s48_s24 }
   0x9   :  { %30 = dma.hbm_to_vmem [thread:$0]  %s23_s16, 256, %s25_s20, [#allocation3], %s1132_s21, %s1132_s21, %s1133_s22  }
   0xa   :  { %s1134_s25 = smov [#allocation7]   ;;  %s65_s28 = sshll.u32 %s1470_s5, 4  ;;  %s66_s28 = int_to_ptr.hbm [resolvable:$true] %s65_s28 }
   0xb   :  { %s50_s26 = sshll.u32 %s1134_s25, 4  ;;  %s1135_s29 = smov [#allocation8]   ;;  %s51_s26 = int_to_ptr.vmem [resolvable:$true] %s50_s26 }
   0xc   :  { %56 = dma.hbm_to_vmem [thread:$0]  %s49_s24, 256, %s51_s26, [#allocation6], %s1132_s21, %s1132_s21, %s1133_s22  }
   0xd   :  { %s67_s30 = sshll.u32 %s1135_s29, 4  ;;  %s68_s30 = int_to_ptr.vmem [resolvable:$true] %s67_s30 }
   0xe   :  { %73 = dma.hbm_to_vmem [thread:$0]  %s66_s28, 2048, %s68_s30, [#allocation9], %s1129_s17, %s1129_s17, %s1130_s18  }
   0xf   :  { %1120 = dma.done.wait [#allocation3], 256  }
  0x10   :  { %1121 = vsyncadd [#allocation3], 4294967040 }
  0x11   :  { %1122 = dma.done.wait [#allocation6], 768  }
  0x12   :  { %1123 = vsyncadd [#allocation6], 4294966528 }
  0x13   :  { %1124 = dma.done.wait [#allocation9], 2048  }
  0x14   :  { %1125 = vsyncadd [#allocation9], 4294965248  ;;  %v1208_v0 = vld [vmem:[#allocation2] sm:$0xff]  ;;  %vm101_vm0 = vcmask 523264   ;;  %v1212_v2 = vld [vmem:[#allocation2 + $0x8] sm:$0xff]  ;;  %v1136_v6 = vmov 64.0  }
  0x15   :  { %v99_v1 = vmul.f32 %v1208_v0, %v1208_v0  ;;  %v100_v4 = vmul.f32 %v1212_v2, %v1212_v2  ;;  %950 = vrcp.f32 %v1136_v6  ;;  %v160_v8 = vld [vmem:[%s1468_s3 + $0x70] sm:$0xff]  ;;  %v161_v9 = vld [vmem:[%s1468_s3 + $0x78] sm:$0xff]  ;;  %v158_v10 = vld [vmem:[%s1468_s3 + $0x60] sm:$0xff]  ;;  %s1138_s17 = smov 96   ;;  %s1139_s19 = smov 112   ;;  %vm244_vm8 = vcmask 130048  }
  0x16   :  { %176 = vmatpush.msra.mxu0 %v160_v8  ;;  %199 = vmatpush.msra.mxu1 %v161_v9  ;;  %v159_v11 = vld [vmem:[%s1468_s3 + $0x68] sm:$0xff]  ;;  %v156_v13 = vld [vmem:[%s1468_s3 + $0x50] sm:$0xff]  ;;  %v157_v14 = vld [vmem:[%s1468_s3 + $0x58] sm:$0xff]  ;;  %s1140_s20 = smov 80   ;;  %s1141_s21 = smov 48   ;;  %vm623_vm9 = vcmask 261120  }
  0x17   :  { %v102_v3 = vsel %vm101_vm0, %v99_v1, 0.0  ;;  %v105_v5 = vsel %vm101_vm0, %v100_v4, 0.0  ;;  %v154_v15 = vld [vmem:[%s1468_s3 + $0x40] sm:$0xff]  ;;  %v155_v16 = vld [vmem:[%s1468_s3 + $0x48] sm:$0xff]  ;;  %v152_v18 = vld [vmem:[%s1468_s3 + $0x30] sm:$0xff]  ;;  %s1142_s22 = smov 32  }
  0x18   :  { %103 = vadd.xlane.f32.xlu0 %v102_v3  ;;  %177 = vmatpush.msra.mxu0 %v158_v10  ;;  %v153_v19 = vld [vmem:[%s1468_s3 + $0x38] sm:$0xff]  ;;  %v150_v20 = vld [vmem:[%s1468_s3 + $0x20] sm:$0xff]  ;;  %v151_v21 = vld [vmem:[%s1468_s3 + $0x28] sm:$0xff]  ;;  %vm626_vm10 = vcmask 392192  }
  0x19   :  { %200 = vmatpush.msra.mxu1 %v159_v11  ;;  %v148_v23 = vld [vmem:[%s1468_s3 + $0x10] sm:$0xff]  ;;  %v149_v24 = vld [vmem:[%s1468_s3 + $0x18] sm:$0xff]  ;;  %v146_v25 = vld [vmem:[%s1468_s3] sm:$0xff] }
  0x1a   :  { %178 = vmatpush.msra.mxu0 %v156_v13  ;;  %v147_v26 = vld [vmem:[%s1468_s3 + $0x8] sm:$0xff]  ;;  %v948_v43 = vld [vmem:[%s1472_s7] ss:$0 sm:$0xff]  ;;  %v214_v54 = vld [vmem:[#allocation5] sm:$0xff]  ;;  %s1137_s7 = smov 64  }
  0x1b   :  { %v951_v7 = vpop.eup %950  ;;  %201 = vmatpush.msra.mxu1 %v157_v14  ;;  %v216_v58 = vld [vmem:[#allocation5 + $0x10] sm:$0xff]  ;;  %v217_v59 = vld [vmem:[#allocation5 + $0x18] sm:$0xff]  ;;  %v215_v1 = vld [vmem:[#allocation5 + $0x8] sm:$0xff] }
  0x1c   :  { %v109_v12 = vmul.f32 64.0, %v951_v7  ;;  %179 = vmatpush.msra.mxu0 %v154_v15  ;;  %vm113_vm1 = vweird.f32 %v951_v7  ;;  %v1292_v13 = vld [vmem:[#allocation7 + $0x8] sm:$0xff] }
  0x1d   :  { %202 = vmatpush.msra.mxu1 %v155_v16 }
  0x1e   :  { %v110_v17 = vsub.f32 1.0, %v109_v12  ;;  %180 = vmatpush.msra.mxu0 %v152_v18  ;;  %v1290_v12 = vld [vmem:[#allocation7] sm:$0xff] }
  0x1f   :  { %203 = vmatpush.msra.mxu1 %v153_v19 }
  0x20   :  { %106 = vadd.xlane.f32.xlu0 %v105_v5  ;;  %v111_v22 = vmul.f32 %v951_v7, %v110_v17  ;;  %181 = vmatpush.msra.mxu0 %v150_v20 }
  0x21   :  { %204 = vmatpush.msra.mxu1 %v151_v21 }
  0x22   :  { %182 = vmatpush.msra.mxu0 %v148_v23  ;;  %v112_v27 = vadd.f32 %v951_v7, %v111_v22 }
  0x23   :  { %205 = vmatpush.msra.mxu1 %v149_v24 }
  0x24   :  { %183 = vmatpush.msra.mxu0 %v146_v25  ;;  %v1266_v28 = vsel %vm113_vm1, %v951_v7, %v112_v27 }
  0x25   :  { %206 = vmatpush.msra.mxu1 %v147_v26 }
  0x8b   :  { %v104_v29 = vpop.xlane.xlu0 %103 }
  0x8c   :  { %v115_v30 = vmul.f32 %v1266_v28, %v104_v29 }
  0x8e   :  { %v117_v31 = vadd.f32 1e-05, %v115_v30 }
  0x90   :  { %952 = vrsqrt.f32 %v117_v31  ;;  %vm125_vm3 = vweird.f32 %v117_v31 }
  0x93   :  { %v107_v32 = vpop.xlane.xlu0 %106 }
  0x94   :  { %v116_v33 = vmul.f32 %v1266_v28, %v107_v32 }
  0x96   :  { %v953_v34 = vpop.eup %952  ;;  %v118_v35 = vadd.f32 1e-05, %v116_v33 }
  0x97   :  { %v120_v36 = vmul.f32 %v953_v34, %v117_v31  ;;  %vm126_vm2 = vweird.f32 %v953_v34 }
  0x98   :  { %954 = vrsqrt.f32 %v118_v35  ;;  %vm127_vm4 = vmor %vm125_vm3, %vm126_vm2  ;;  %vm135_vm6 = vweird.f32 %v118_v35 }
  0x99   :  { %v121_v37 = vmul.f32 %v953_v34, %v120_v36 }
  0x9b   :  { %v122_v38 = vmul.f32 0.5, %v121_v37 }
  0x9d   :  { %v123_v39 = vsub.f32 1.5, %v122_v38 }
  0x9e   :  { %v955_v40 = vpop.eup %954 }
  0x9f   :  { %v124_v41 = vmul.f32 %v953_v34, %v123_v39  ;;  %v130_v42 = vmul.f32 %v955_v40, %v118_v35  ;;  %vm136_vm5 = vweird.f32 %v955_v40 }
  0xa0   :  { %vm137_vm7 = vmor %vm135_vm6, %vm136_vm5 }
  0xa1   :  { %v131_v44 = vmul.f32 %v955_v40, %v130_v42  ;;  %v128_v45 = vsel %vm127_vm4, %v953_v34, %v124_v41 }
  0xa2   :  { %v139_v46 = vmul.f32 %v128_v45, %v1208_v0 }
  0xa3   :  { %v132_v47 = vmul.f32 0.5, %v131_v44 }
  0xa4   :  { %v144_v48 = vmul.f32 %v948_v43, %v139_v46 }
  0xa5   :  { %v133_v49 = vsub.f32 1.5, %v132_v47 }
  0xa6   :  { %884 = vmatmul.msk.f32.vlgmr.msra.gmra.mxu0 %vm101_vm0, %v144_v48  ;;  %886 = vmatmul.msk.f32.vlgmr.msra.gmra.mxu1 %vm101_vm0, %v144_v48 }
  0xa7   :  { %v134_v50 = vmul.f32 %v955_v40, %v133_v49 }
  0xa9   :  { %v138_v51 = vsel %vm137_vm7, %v955_v40, %v134_v50 }
  0xaa   :  { %v140_v52 = vmul.f32 %v138_v51, %v1212_v2 }
  0xac   :  { %v145_v53 = vmul.f32 %v948_v43, %v140_v52 }
  0xae   :  { %885 = vmatmul.msk.f32.gmra.mxu0 %vm101_vm0, %v145_v53  ;;  %887 = vmatmul.msk.f32.gmra.mxu1 %vm101_vm0, %v145_v53 }
 0x123   :  { %v185_v55 = vpop.f32.mrf.mxu0  ;;  %v208_v56 = vpop.f32.mrf.mxu1 }
 0x124   :  { %v218_v57 = vmul.f32 %v214_v54, %v185_v55  ;;  %v219_v3 = vmul.f32 %v215_v1, %v208_v56 }
 0x126   :  { %224 = vrot.lane.b32.xlu2 %v218_v57, %s1137_s7 }
 0x12b   :  { %v188_v60 = vpop.f32.mrf.mxu0  ;;  %v211_v61 = vpop.f32.mrf.mxu1 }
 0x12c   :  { %v220_v62 = vmul.f32 %v216_v58, %v188_v60  ;;  %v221_v63 = vmul.f32 %v217_v59, %v211_v61 }
 0x12e   :  { %236 = vrot.lane.b32.xlu1 %v221_v63, %s1138_s17  ;;  %226 = vrot.lane.b32.xlu2 %v220_v62, %s1137_s7  ;;  %v1298_v20 = vpack.i.bf16 %v219_v3, %v221_v63 }
 0x136   :  { %234 = vrot.lane.b32.xlu1 %v219_v3, %s1138_s17 }
 0x180   :  { %v225_v4 = vpop.permute.xlu2 %224 }
 0x181   :  { %v230_v5 = vadd.f32 %v225_v4, %v218_v57 }
 0x183   :  { %337 = vrot.lane.b32.xlu2 %v230_v5, %s1139_s19 }
 0x188   :  { %v227_v9 = vpop.permute.xlu2 %226 }
 0x189   :  { %v231_v11 = vadd.f32 %v227_v9, %v220_v62 }
 0x1a0   :  { %v237_v6 = vpop.permute.xlu1 %236 }
 0x1a1   :  { %v241_v7 = vadd.f32 %v237_v6, %v221_v63 }
 0x1a3   :  { %888 = vmatpush.xpose.msk.msrb.mxu0 %vm244_vm8, %v241_v7  ;;  %920 = vmatpush.xpose.msk.msrb.mxu1 %vm244_vm8, %v241_v7 }
 0x1a8   :  { %v235_v8 = vpop.permute.xlu1 %234 }
 0x1a9   :  { %v240_v10 = vadd.f32 %v235_v8, %v219_v3 }
 0x1ab   :  { %889 = vmatpush.xpose.msk.msrb.mxu0 %vm244_vm8, %v240_v10  ;;  %921 = vmatpush.xpose.msk.msrb.mxu1 %vm244_vm8, %v240_v10 }
 0x1ae   :  { %890 = vmatmul.msk.f32.vlgmr.msrb.gmra.mxu0 %vm244_vm8, %v230_v5  ;;  %891 = vmatmul.msk.f32.vlgmr.msrb.gmra.mxu1 %vm244_vm8, %v231_v11 }
 0x1dd   :  { %v338_v35 = vpop.permute.xlu2 %337 }
 0x22b   :  { %v274_v14 = vpop.f32.mrf.mxu0  ;;  %v277_v15 = vpop.f32.mrf.mxu1 }
 0x22c   :  { %v275_v16 = vadd.f32 %v274_v14, %v1290_v12  ;;  %v278_v17 = vadd.f32 %v277_v15, %v1292_v13 }
 0x22e   :  { %v280_v18 = vsel %vm244_vm8, %v275_v16, -inf  ;;  %v283_v19 = vsel %vm244_vm8, %v278_v17, -inf }
 0x22f   :  { %281 = vmax.xlane.f32.xlu0 %v280_v18  ;;  %284 = vmax.xlane.f32.xlu1 %v283_v19 }
 0x243   :  { %939 = vrot.lane.b32.xlu0 %v1298_v20, %s1137_s7 }
 0x248   :  { %339 = vrot.lane.b32.xlu1 %v231_v11, %s1139_s19 }
 0x250   :  { %423 = vrot.lane.b32.xlu1 %v240_v10, %s1139_s19 }
 0x258   :  { %419 = vrot.lane.b32.xlu1 %v230_v5, %s1138_s17 }
 0x2a2   :  { %v282_v21 = vpop.xlane.xlu0 %281  ;;  %v285_v22 = vpop.xlane.xlu1 %284 }
 0x2a3   :  { %v286_v23 = vsub.f32 %v275_v16, %v282_v21  ;;  %v287_v24 = vsub.f32 %v278_v17, %v285_v22 }
 0x2a5   :  { %v288_v25 = vmul.f32 1.442695, %v286_v23  ;;  %v290_v26 = vmul.f32 1.442695, %v287_v24 }
 0x2a7   :  { %956 = vpow2.f32 %v288_v25 }
 0x2a8   :  { %958 = vpow2.f32 %v290_v26 }
 0x2ad   :  { %v957_v27 = vpop.eup %956 }
 0x2ae   :  { %v959_v29 = vpop.eup %958  ;;  %v292_v30 = vsel %vm244_vm8, %v957_v27, 0.0 }
 0x2af   :  { %293 = vadd.xlane.f32.xlu2 %v292_v30  ;;  %v295_v31 = vsel %vm244_vm8, %v959_v29, 0.0 }
 0x2b0   :  { %296 = vadd.xlane.f32.xlu0 %v295_v31 }
 0x2b5   :  { %v940_v32 = vpop.permute.xlu0 %939 }
 0x2b6   :  { %v941_v33 = vunpack.i.l.bf16 %v940_v32  ;;  %v942_v34 = vunpack.i.h.bf16 %v940_v32 }
 0x2b8   :  { %328 = vmatpush.msra.mxu3 %v941_v33  ;;  %410 = vmatpush.msra.mxu2 %v941_v33 }
 0x2ba   :  { %329 = vmatpush.msra.mxu3 %v942_v34  ;;  %411 = vmatpush.msra.mxu2 %v942_v34  ;;  %v340_v36 = vpop.permute.xlu1 %339 }
 0x2bc   :  { %894 = vmatpush.xpose.msk.msrb.mxu3 %vm244_vm8, %v241_v7 }
 0x2c0   :  { %895 = vmatpush.xpose.msk.msrb.mxu3 %vm244_vm8, %v240_v10 }
 0x2c2   :  { %v424_v39 = vpop.permute.xlu1 %423 }
 0x2c4   :  { %515 = vrot.lane.b32.xlu0 %v230_v5, %s1140_s20 }
 0x2c7   :  { %425 = vrot.lane.b32.xlu2 %v241_v7, %s1139_s19 }
 0x2ca   :  { %v420_v44 = vpop.permute.xlu1 %419 }
 0x2cf   :  { %517 = vrot.lane.b32.xlu2 %v231_v11, %s1140_s20  ;;  %s872_s20 = sshll.u32 %s1474_s9, 4  ;;  %s873_s20 = int_to_ptr.hbm [resolvable:$true] %s872_s20 }
 0x2d7   :  { %421 = vrot.lane.b32.xlu2 %v231_v11, %s1138_s17 }
 0x322   :  { %v294_v37 = vpop.xlane.xlu2 %293 }
 0x323   :  { %960 = vrcp.f32 %v294_v37  ;;  %v297_v38 = vpop.xlane.xlu0 %296 }
 0x324   :  { %962 = vrcp.f32 %v297_v38 }
 0x329   :  { %v961_v40 = vpop.eup %960 }
 0x32a   :  { %v426_v41 = vpop.permute.xlu2 %425  ;;  %v300_v42 = vmul.f32 %v961_v40, %v957_v27  ;;  %v963_v43 = vpop.eup %962 }
 0x32b   :  { %900 = vmatpush.xpose.msk.msra.mxu0 %vm244_vm8, %v426_v41  ;;  %v301_v46 = vmul.f32 %v963_v43, %v959_v29 }
 0x32c   :  { %892 = vmatmul.msk.f32.vlgmr.msra.gmra.mxu3 %vm244_vm8, %v300_v42 }
 0x32d   :  { %906 = vmatpush.xpose.msk.msra.mxu3 %vm244_vm8, %v426_v41 }
 0x32f   :  { %901 = vmatpush.xpose.msk.msra.mxu0 %vm244_vm8, %v424_v39 }
 0x331   :  { %907 = vmatpush.xpose.msk.msra.mxu3 %vm244_vm8, %v424_v39 }
 0x332   :  { %902 = vmatmul.msk.f32.vlgmr.msra.gmra.mxu0 %vm244_vm8, %v420_v44  ;;  %v518_v45 = vpop.permute.xlu2 %517 }
 0x334   :  { %893 = vmatmul.msk.f32.gmra.mxu3 %vm244_vm8, %v301_v46 }
 0x336   :  { %v516_v48 = vpop.permute.xlu0 %515 }
 0x33a   :  { %v422_v47 = vpop.permute.xlu2 %421 }
 0x33b   :  { %903 = vmatmul.msk.f32.gmra.mxu0 %vm244_vm8, %v422_v47 }
 0x33c   :  { %896 = vmatmul.msk.f32.vlgmr.msrb.gmra.mxu3 %vm244_vm8, %v338_v35 }
 0x344   :  { %897 = vmatmul.msk.f32.gmra.mxu3 %vm244_vm8, %v340_v36 }
 0x34c   :  { %908 = vmatmul.msk.f32.vlgmr.msra.gmra.mxu3 %vm244_vm8, %v516_v48 }
 0x354   :  { %909 = vmatmul.msk.f32.gmra.mxu3 %vm244_vm8, %v518_v45 }
 0x3af   :  { %v1323_v49 = vpop.f32.mrf.mxu3  ;;  %v452_v54 = vpop.f32.mrf.mxu0 }
 0x3b0   :  { %v453_v55 = vadd.f32 %v452_v54, %v1290_v12 }
 0x3b2   :  { %v458_v59 = vsel %vm244_vm8, %v453_v55, -inf }
 0x3b7   :  { %v1325_v50 = vpop.f32.mrf.mxu3 }
 0x3b8   :  { %v455_v63 = vpop.f32.mrf.mxu0 }
 0x3b9   :  { %v456_v1 = vadd.f32 %v455_v63, %v1292_v13 }
 0x3bb   :  { %v461_v6 = vsel %vm244_vm8, %v456_v1, -inf }
 0x3bf   :  { %v362_v51 = vpop.f32.mrf.mxu3 }
 0x3c0   :  { %v363_v52 = vadd.f32 %v362_v51, %v1290_v12 }
 0x3c2   :  { %v368_v53 = vsel %vm244_vm8, %v363_v52, -inf }
 0x3c3   :  { %369 = vmax.xlane.f32.xlu1 %v368_v53 }
 0x3c7   :  { %v365_v56 = vpop.f32.mrf.mxu3 }
 0x3c8   :  { %v366_v57 = vadd.f32 %v365_v56, %v1292_v13 }
 0x3ca   :  { %v371_v58 = vsel %vm244_vm8, %v366_v57, -inf }
 0x3cb   :  { %372 = vmax.xlane.f32.xlu2 %v371_v58  ;;  %459 = vmax.xlane.f32.xlu1 %v458_v59 }
 0x3cf   :  { %v540_v60 = vpop.f32.mrf.mxu3 }
 0x3d0   :  { %v541_v61 = vadd.f32 %v540_v60, %v1290_v12 }
 0x3d2   :  { %v546_v62 = vsel %vm244_vm8, %v541_v61, -inf }
 0x3d3   :  { %547 = vmax.xlane.f32.xlu0 %v546_v62 }
 0x3d7   :  { %v543_v3 = vpop.f32.mrf.mxu3 }
 0x3d8   :  { %v544_v4 = vadd.f32 %v543_v3, %v1292_v13 }
 0x3da   :  { %v549_v5 = vsel %vm244_vm8, %v544_v4, -inf }
 0x3db   :  { %550 = vmax.xlane.f32.xlu2 %v549_v5  ;;  %462 = vmax.xlane.f32.xlu0 %v461_v6  ;;  %v636_v5 = vld [vmem:[%s1469_s4 + $0x38] sm:$0xff]  ;;  %v635_v6 = vld [vmem:[%s1469_s4 + $0x30] sm:$0xff] }
 0x3dc   :  { %651 = vmatpush.msrb.mxu0 %v636_v5 }
 0x3de   :  { %652 = vmatpush.msrb.mxu0 %v635_v6 }
 0x436   :  { %v370_v7 = vpop.xlane.xlu1 %369 }
 0x437   :  { %v374_v8 = vsub.f32 %v363_v52, %v370_v7  ;;  %v634_v7 = vld [vmem:[%s1469_s4 + $0x28] sm:$0xff] }
 0x438   :  { %653 = vmatpush.msrb.mxu0 %v634_v7 }
 0x439   :  { %v376_v9 = vmul.f32 1.442695, %v374_v8  ;;  %v633_v8 = vld [vmem:[%s1469_s4 + $0x20] sm:$0xff] }
 0x43a   :  { %654 = vmatpush.msrb.mxu0 %v633_v8 }
 0x43b   :  { %964 = vpow2.f32 %v376_v9  ;;  %v632_v9 = vld [vmem:[%s1469_s4 + $0x18] sm:$0xff] }
 0x43c   :  { %655 = vmatpush.msrb.mxu0 %v632_v9 }
 0x43e   :  { %v460_v10 = vpop.xlane.xlu1 %459  ;;  %v373_v11 = vpop.xlane.xlu2 %372 }
 0x43f   :  { %v464_v12 = vsub.f32 %v453_v55, %v460_v10  ;;  %v375_v14 = vsub.f32 %v366_v57, %v373_v11  ;;  %v631_v10 = vld [vmem:[%s1469_s4 + $0x10] sm:$0xff]  ;;  %v630_v11 = vld [vmem:[%s1469_s4 + $0x8] sm:$0xff] }
 0x440   :  { %656 = vmatpush.msrb.mxu0 %v631_v10  ;;  %v833_v10 = vld [vmem:[%s1471_s6 + $0x78] sm:$0xff] }
 0x441   :  { %v965_v15 = vpop.eup %964  ;;  %v466_v16 = vmul.f32 1.442695, %v464_v12  ;;  %v378_v17 = vmul.f32 1.442695, %v375_v14  ;;  %v629_v12 = vld [vmem:[%s1469_s4] sm:$0xff] }
 0x442   :  { %v380_v18 = vsel %vm244_vm8, %v965_v15, 0.0  ;;  %657 = vmatpush.msrb.mxu0 %v630_v11  ;;  %v832_v11 = vld [vmem:[%s1471_s6 + $0x70] sm:$0xff] }
 0x443   :  { %966 = vpow2.f32 %v466_v16  ;;  %381 = vadd.xlane.f32.xlu1 %v380_v18 }
 0x444   :  { %968 = vpow2.f32 %v378_v17  ;;  %658 = vmatpush.msrb.mxu0 %v629_v12  ;;  %v831_v12 = vld [vmem:[%s1471_s6 + $0x68] sm:$0xff] }
 0x446   :  { %v548_v13 = vpop.xlane.xlu0 %547 }
 0x447   :  { %v552_v19 = vsub.f32 %v541_v61, %v548_v13 }
 0x449   :  { %v967_v21 = vpop.eup %966  ;;  %v554_v22 = vmul.f32 1.442695, %v552_v19 }
 0x44a   :  { %v969_v23 = vpop.eup %968  ;;  %v470_v24 = vsel %vm244_vm8, %v967_v21, 0.0 }
 0x44b   :  { %970 = vpow2.f32 %v554_v22  ;;  %471 = vadd.xlane.f32.xlu1 %v470_v24  ;;  %v383_v25 = vsel %vm244_vm8, %v969_v23, 0.0 }
 0x44c   :  { %384 = vadd.xlane.f32.xlu2 %v383_v25 }
 0x44e   :  { %v463_v26 = vpop.xlane.xlu0 %462  ;;  %v551_v27 = vpop.xlane.xlu2 %550 }
 0x44f   :  { %v465_v29 = vsub.f32 %v456_v1, %v463_v26  ;;  %v553_v30 = vsub.f32 %v544_v4, %v551_v27 }
 0x451   :  { %v971_v31 = vpop.eup %970  ;;  %v468_v32 = vmul.f32 1.442695, %v465_v29  ;;  %v556_v33 = vmul.f32 1.442695, %v553_v30 }
 0x452   :  { %v558_v34 = vsel %vm244_vm8, %v971_v31, 0.0 }
 0x453   :  { %972 = vpow2.f32 %v468_v32  ;;  %559 = vadd.xlane.f32.xlu0 %v558_v34  ;;  %v723_v34 = vld [vmem:[#allocation8 + $0x78] sm:$0xff] }
 0x454   :  { %974 = vpow2.f32 %v556_v33  ;;  %v722_v33 = vld [vmem:[#allocation8 + $0x70] sm:$0xff]  ;;  %761 = vmatpush.msrb.mxu3 %v723_v34 }
 0x459   :  { %v973_v35 = vpop.eup %972 }
 0x45a   :  { %v975_v36 = vpop.eup %974  ;;  %v473_v37 = vsel %vm244_vm8, %v973_v35, 0.0 }
 0x45b   :  { %474 = vadd.xlane.f32.xlu1 %v473_v37  ;;  %v561_v38 = vsel %vm244_vm8, %v975_v36, 0.0  ;;  %v719_v37 = vld [vmem:[#allocation8 + $0x58] sm:$0xff] }
 0x45c   :  { %562 = vadd.xlane.f32.xlu0 %v561_v38  ;;  %v717_v38 = vld [vmem:[#allocation8 + $0x48] sm:$0xff] }
 0x464   :  { %944 = vrot.lane.b32.xlu2 %v1298_v20, %s1141_s21 }
 0x4b6   :  { %v382_v39 = vpop.xlane.xlu1 %381 }
 0x4b7   :  { %976 = vrcp.f32 %v382_v39  ;;  %v714_v39 = vld [vmem:[#allocation8 + $0x30] sm:$0xff] }
 0x4bd   :  { %v977_v40 = vpop.eup %976 }
 0x4be   :  { %v388_v41 = vmul.f32 %v977_v40, %v965_v15  ;;  %v472_v42 = vpop.xlane.xlu1 %471  ;;  %v715_v40 = vld [vmem:[#allocation8 + $0x38] sm:$0xff] }
 0x4bf   :  { %v385_v43 = vpop.xlane.xlu2 %384 }
 0x4c0   :  { %978 = vrcp.f32 %v385_v43  ;;  %898 = vmatmul.msk.f32.vlgmr.msra.gmra.mxu2 %vm244_vm8, %v388_v41  ;;  %v712_v41 = vld [vmem:[#allocation8 + $0x20] sm:$0xff]  ;;  %v710_v43 = vld [vmem:[#allocation8 + $0x10] sm:$0xff] }
 0x4c1   :  { %980 = vrcp.f32 %v472_v42  ;;  %v713_v42 = vld [vmem:[#allocation8 + $0x28] sm:$0xff] }
 0x4c6   :  { %v979_v44 = vpop.eup %978  ;;  %v560_v45 = vpop.xlane.xlu0 %559 }
 0x4c7   :  { %982 = vrcp.f32 %v560_v45  ;;  %v945_v46 = vpop.permute.xlu2 %944  ;;  %v389_v47 = vmul.f32 %v979_v44, %v969_v23  ;;  %v981_v48 = vpop.eup %980  ;;  %v711_v44 = vld [vmem:[#allocation8 + $0x18] sm:$0xff]  ;;  %v708_v45 = vld [vmem:[#allocation8] sm:$0xff] }
 0x4c8   :  { %v946_v51 = vunpack.i.l.bf16 %v945_v46  ;;  %v947_v20 = vunpack.i.h.bf16 %v945_v46  ;;  %v478_v52 = vmul.f32 %v981_v48, %v967_v21  ;;  %v709_v46 = vld [vmem:[#allocation8 + $0x8] sm:$0xff] }
 0x4c9   :  { %899 = vmatmul.msk.f32.gmra.mxu2 %vm244_vm8, %v389_v47 }
 0x4ca   :  { %506 = vmatpush.msra.mxu1 %v946_v51  ;;  %588 = vmatpush.msrb.mxu2 %v946_v51 }
 0x4cc   :  { %507 = vmatpush.msra.mxu1 %v947_v20  ;;  %589 = vmatpush.msrb.mxu2 %v947_v20 }
 0x4cd   :  { %v983_v53 = vpop.eup %982  ;;  %904 = vmatmul.msk.f32.vlgmr.msra.gmra.mxu1 %vm244_vm8, %v478_v52 }
 0x4ce   :  { %v475_v54 = vpop.xlane.xlu1 %474  ;;  %v566_v55 = vmul.f32 %v983_v53, %v971_v31  ;;  %738 = vmatpush.msrb.mxu1 %v722_v33  ;;  %834 = vmatpush.msra.mxu2 %v833_v10 }
 0x4cf   :  { %984 = vrcp.f32 %v475_v54  ;;  %v563_v56 = vpop.xlane.xlu0 %562 }
 0x4d0   :  { %986 = vrcp.f32 %v563_v56  ;;  %835 = vmatpush.msra.mxu2 %v832_v11 }
 0x4d1   :  { %910 = vmatmul.msk.f32.vlgmr.msrb.gmra.mxu2 %vm244_vm8, %v566_v55 }
 0x4d2   :  { %836 = vmatpush.msra.mxu2 %v831_v12 }
 0x4d5   :  { %v985_v57 = vpop.eup %984 }
 0x4d6   :  { %v987_v58 = vpop.eup %986  ;;  %v479_v59 = vmul.f32 %v985_v57, %v973_v35  ;;  %v721_v35 = vld [vmem:[#allocation8 + $0x68] sm:$0xff] }
 0x4d7   :  { %v567_v60 = vmul.f32 %v987_v58, %v975_v36  ;;  %762 = vmatpush.msrb.mxu3 %v721_v35  ;;  %v718_v36 = vld [vmem:[#allocation8 + $0x50] sm:$0xff] }
 0x4d8   :  { %905 = vmatmul.msk.f32.gmra.mxu1 %vm244_vm8, %v479_v59 }
 0x4d9   :  { %911 = vmatmul.msk.f32.gmra.mxu2 %vm244_vm8, %v567_v60  ;;  %763 = vmatpush.msrb.mxu3 %v719_v37  ;;  %v949_v60 = vld [vmem:[%s1473_s8] ss:$0 sm:$0xff] }
 0x4db   :  { %764 = vmatpush.msrb.mxu3 %v717_v38 }
 0x4dd   :  { %765 = vmatpush.msrb.mxu3 %v715_v40 }
 0x4df   :  { %766 = vmatpush.msrb.mxu3 %v713_v42 }
 0x4e1   :  { %767 = vmatpush.msrb.mxu3 %v711_v44 }
 0x4e3   :  { %768 = vmatpush.msrb.mxu3 %v709_v46 }
 0x543   :  { %v413_v61 = vpop.f32.mrf.mxu2 }
 0x544   :  { %599 = vrot.lane.b32.xlu0 %v413_v61, %s1130_s18 }
 0x54a   :  { %v509_v62 = vpop.f32.mrf.mxu1 }
 0x54b   :  { %607 = vrot.lane.b32.xlu1 %v509_v62, %s1142_s22 }
 0x54c   :  { %v416_v63 = vpop.f32.mrf.mxu2 }
 0x54d   :  { %601 = vrot.lane.b32.xlu0 %v416_v63, %s1130_s18 }
 0x554   :  { %v591_v1 = vpop.f32.mrf.mxu2 }
 0x555   :  { %615 = vrot.lane.b32.xlu2 %v591_v1, %s1141_s21  ;;  %v512_v3 = vpop.f32.mrf.mxu1 }
 0x55c   :  { %v594_v4 = vpop.f32.mrf.mxu2 }
 0x55d   :  { %617 = vrot.lane.b32.xlu1 %v594_v4, %s1141_s21  ;;  %609 = vrot.lane.b32.xlu2 %v512_v3, %s1142_s22 }
 0x5af   :  { %v616_v17 = vpop.permute.xlu2 %615 }
 0x5b6   :  { %v600_v14 = vpop.permute.xlu0 %599 }
 0x5b7   :  { %v621_v15 = vsel %vm244_vm8, %v1323_v49, %v600_v14  ;;  %v610_v22 = vpop.permute.xlu2 %609  ;;  %v830_v14 = vld [vmem:[%s1471_s6 + $0x60] sm:$0xff] }
 0x5b8   :  { %837 = vmatpush.msra.mxu2 %v830_v14 }
 0x5bd   :  { %v608_v16 = vpop.permute.xlu1 %607 }
 0x5be   :  { %v624_v18 = vsel %vm623_vm9, %v621_v15, %v608_v16  ;;  %v829_v15 = vld [vmem:[%s1471_s6 + $0x58] sm:$0xff]  ;;  %v828_v16 = vld [vmem:[%s1471_s6 + $0x50] sm:$0xff] }
 0x5bf   :  { %v627_v13 = vsel %vm626_vm10, %v624_v18, %v616_v17  ;;  %v602_v19 = vpop.permute.xlu0 %601  ;;  %838 = vmatpush.msra.mxu2 %v829_v15  ;;  %v827_v17 = vld [vmem:[%s1471_s6 + $0x48] sm:$0xff]  ;;  %v826_v18 = vld [vmem:[%s1471_s6 + $0x40] sm:$0xff] }
 0x5c0   :  { %912 = vmatmul.msk.f32.vlgmr.msrb.gmra.mxu0 %vm101_vm0, %v627_v13  ;;  %v622_v21 = vsel %vm244_vm8, %v1325_v50, %v602_v19  ;;  %v825_v13 = vld [vmem:[%s1471_s6 + $0x38] sm:$0xff]  ;;  %v824_v19 = vld [vmem:[%s1471_s6 + $0x30] sm:$0xff] }
 0x5c1   :  { %v625_v24 = vsel %vm623_vm9, %v622_v21, %v610_v22  ;;  %839 = vmatpush.msra.mxu2 %v828_v16  ;;  %v823_v21 = vld [vmem:[%s1471_s6 + $0x28] sm:$0xff]  ;;  %v822_v22 = vld [vmem:[%s1471_s6 + $0x20] sm:$0xff] }
 0x5c3   :  { %840 = vmatpush.msra.mxu2 %v827_v17 }
 0x5c5   :  { %841 = vmatpush.msra.mxu2 %v826_v18 }
 0x5c7   :  { %842 = vmatpush.msra.mxu2 %v825_v13 }
 0x5c9   :  { %843 = vmatpush.msra.mxu2 %v824_v19 }
 0x5cb   :  { %844 = vmatpush.msra.mxu2 %v823_v21 }
 0x5cd   :  { %845 = vmatpush.msra.mxu2 %v822_v22 }
 0x5cf   :  { %v618_v23 = vpop.permute.xlu1 %617 }
 0x5d0   :  { %v628_v25 = vsel %vm626_vm10, %v625_v24, %v618_v23  ;;  %v821_v23 = vld [vmem:[%s1471_s6 + $0x18] sm:$0xff]  ;;  %v820_v24 = vld [vmem:[%s1471_s6 + $0x10] sm:$0xff] }
 0x5d1   :  { %913 = vmatmul.msk.f32.gmra.mxu0 %vm101_vm0, %v628_v25  ;;  %846 = vmatpush.msra.mxu2 %v821_v23  ;;  %v819_v25 = vld [vmem:[%s1471_s6 + $0x8] sm:$0xff] }
 0x5d3   :  { %847 = vmatpush.msra.mxu2 %v820_v24 }
 0x5d5   :  { %848 = vmatpush.msra.mxu2 %v819_v25 }
 0x63d   :  { %v660_v26 = vpop.f32.mrf.mxu0 }
 0x63e   :  { %v1388_v27 = vadd.f32 %v660_v26, %v1208_v0  ;;  %v720_v0 = vld [vmem:[#allocation8 + $0x60] sm:$0xff] }
 0x63f   :  { %739 = vmatpush.msrb.mxu1 %v720_v0 }
 0x640   :  { %v669_v49 = vmul.f32 %v1388_v27, %v1388_v27 }
 0x641   :  { %740 = vmatpush.msrb.mxu1 %v718_v36 }
 0x642   :  { %v671_v29 = vsel %vm101_vm0, %v669_v49, 0.0  ;;  %v818_v49 = vld [vmem:[%s1471_s6] sm:$0xff]  ;;  %s1143_s6 = smov [#allocation10]  }
 0x643   :  { %672 = vadd.xlane.f32.xlu0 %v671_v29  ;;  %849 = vmatpush.msra.mxu2 %v818_v49  ;;  %s870_s16 = sshll.u32 %s1143_s6, 4  ;;  %s871_s16 = int_to_ptr.vmem [resolvable:$true] %s870_s16 }
 0x64e   :  { %v663_v30 = vpop.f32.mrf.mxu0 }
 0x64f   :  { %v1394_v31 = vadd.f32 %v663_v30, %v1212_v2  ;;  %v716_v2 = vld [vmem:[#allocation8 + $0x40] sm:$0xff] }
 0x650   :  { %741 = vmatpush.msrb.mxu1 %v716_v2 }
 0x651   :  { %v670_v50 = vmul.f32 %v1394_v31, %v1394_v31 }
 0x652   :  { %742 = vmatpush.msrb.mxu1 %v714_v39 }
 0x653   :  { %v674_v32 = vsel %vm101_vm0, %v670_v50, 0.0 }
 0x654   :  { %675 = vadd.xlane.f32.xlu2 %v674_v32  ;;  %743 = vmatpush.msrb.mxu1 %v712_v41 }
 0x656   :  { %744 = vmatpush.msrb.mxu1 %v710_v43 }
 0x658   :  { %745 = vmatpush.msrb.mxu1 %v708_v45 }
 0x6b6   :  { %v673_v47 = vpop.xlane.xlu0 %672 }
 0x6b7   :  { %v677_v48 = vmul.f32 %v673_v47, %v1266_v28 }
 0x6b9   :  { %v679_v51 = vadd.f32 1e-05, %v677_v48 }
 0x6bb   :  { %988 = vrsqrt.f32 %v679_v51  ;;  %vm687_vm12 = vweird.f32 %v679_v51 }
 0x6c1   :  { %v989_v20 = vpop.eup %988 }
 0x6c2   :  { %v682_v52 = vmul.f32 %v989_v20, %v679_v51  ;;  %vm688_vm11 = vweird.f32 %v989_v20 }
 0x6c3   :  { %vm689_vm13 = vmor %vm687_vm12, %vm688_vm11 }
 0x6c4   :  { %v683_v53 = vmul.f32 %v989_v20, %v682_v52 }
 0x6c6   :  { %v684_v54 = vmul.f32 0.5, %v683_v53 }
 0x6c7   :  { %v676_v55 = vpop.xlane.xlu2 %675 }
 0x6c8   :  { %v685_v56 = vsub.f32 1.5, %v684_v54  ;;  %v678_v57 = vmul.f32 %v676_v55, %v1266_v28 }
 0x6ca   :  { %v686_v58 = vmul.f32 %v989_v20, %v685_v56  ;;  %v680_v59 = vadd.f32 1e-05, %v678_v57 }
 0x6cc   :  { %v690_v61 = vsel %vm689_vm13, %v989_v20, %v686_v58  ;;  %990 = vrsqrt.f32 %v680_v59  ;;  %vm697_vm15 = vweird.f32 %v680_v59 }
 0x6cd   :  { %v701_v62 = vmul.f32 %v690_v61, %v1388_v27 }
 0x6cf   :  { %v706_v63 = vmul.f32 %v949_v60, %v701_v62 }
 0x6d1   :  { %914 = vmatmul.msk.f32.vlgmr.msrb.gmra.mxu1 %vm101_vm0, %v706_v63  ;;  %916 = vmatmul.msk.f32.vlgmr.msrb.gmra.mxu3 %vm101_vm0, %v706_v63 }
 0x6d2   :  { %v991_v1 = vpop.eup %990 }
 0x6d3   :  { %v692_v3 = vmul.f32 %v991_v1, %v680_v59  ;;  %vm698_vm14 = vweird.f32 %v991_v1 }
 0x6d4   :  { %vm699_vm1 = vmor %vm697_vm15, %vm698_vm14 }
 0x6d5   :  { %v693_v28 = vmul.f32 %v991_v1, %v692_v3 }
 0x6d7   :  { %v694_v4 = vmul.f32 0.5, %v693_v28 }
 0x6d9   :  { %v695_v5 = vsub.f32 1.5, %v694_v4 }
 0x6db   :  { %v696_v6 = vmul.f32 %v991_v1, %v695_v5 }
 0x6dd   :  { %v700_v7 = vsel %vm699_vm1, %v991_v1, %v696_v6 }
 0x6de   :  { %v702_v8 = vmul.f32 %v700_v7, %v1394_v31 }
 0x6e0   :  { %v707_v9 = vmul.f32 %v949_v60, %v702_v8 }
 0x6e2   :  { %915 = vmatmul.msk.f32.gmra.mxu1 %vm101_vm0, %v707_v9  ;;  %917 = vmatmul.msk.f32.gmra.mxu3 %vm101_vm0, %v707_v9 }
 0x74e   :  { %v747_v26 = vpop.f32.mrf.mxu1 }
 0x74f   :  { %v918_v29 = vmul.f32 -1.442695, %v747_v26 }
 0x751   :  { %992 = vpow2.f32 %v918_v29 }
 0x754   :  { %v770_v45 = vpop.f32.mrf.mxu3 }
 0x757   :  { %v993_v30 = vpop.eup %992 }
 0x758   :  { %v782_v50 = vadd.f32 1.0, %v993_v30 }
 0x75a   :  { %994 = vrcp.f32 %v782_v50  ;;  %v795_v36 = vand.u32 2147483648, %v782_v50  ;;  %v793_v2 = vand.u32 2147483647, %v782_v50  ;;  %vm789_vm3 = vweird.f32 %v782_v50 }
 0x75c   :  { %v796_v40 = vor.u32 1.1754944e-38, %v795_v36  ;;  %vm794_vm5 = vcmp.eq.f32.partialorder %v793_v2, 8.507059e+37 }
 0x75f   :  { %v750_v32 = vpop.f32.mrf.mxu1 }
 0x760   :  { %v995_v33 = vpop.eup %994  ;;  %v919_v34 = vmul.f32 -1.442695, %v750_v32 }
 0x761   :  { %v785_v0 = vmul.f32 %v995_v33, %v782_v50  ;;  %vm790_vm2 = vweird.f32 %v995_v33 }
 0x762   :  { %996 = vpow2.f32 %v919_v34  ;;  %vm791_vm4 = vmor %vm789_vm3, %vm790_vm2 }
 0x763   :  { %v786_v35 = vsub.f32 1.0, %v785_v0 }
 0x765   :  { %v787_v37 = vmul.f32 %v995_v33, %v786_v35  ;;  %v773_v59 = vpop.f32.mrf.mxu3 }
 0x767   :  { %v788_v38 = vadd.f32 %v995_v33, %v787_v37 }
 0x768   :  { %v997_v39 = vpop.eup %996 }
 0x769   :  { %v792_v41 = vsel %vm791_vm4, %v995_v33, %v788_v38  ;;  %v783_v42 = vadd.f32 1.0, %v997_v39 }
 0x76a   :  { %v797_v43 = vsel %vm794_vm5, %v796_v40, %v792_v41 }
 0x76b   :  { %v814_v44 = vmul.f32 %v797_v43, %v747_v26  ;;  %998 = vrcp.f32 %v783_v42  ;;  %v810_v20 = vand.u32 2147483648, %v783_v42  ;;  %v808_v53 = vand.u32 2147483647, %v783_v42 }
 0x76c   :  { %vm804_vm7 = vweird.f32 %v783_v42 }
 0x76d   :  { %v816_v46 = vmul.f32 %v814_v44, %v770_v45  ;;  %v811_v55 = vor.u32 1.1754944e-38, %v810_v20  ;;  %vm809_vm9 = vcmp.eq.f32.partialorder %v808_v53, 8.507059e+37 }
 0x76f   :  { %850 = vmatmul.f32.vlgmr.msra.gmra.mxu2 %v816_v46 }
 0x771   :  { %v999_v47 = vpop.eup %998 }
 0x772   :  { %v800_v48 = vmul.f32 %v999_v47, %v783_v42  ;;  %vm805_vm6 = vweird.f32 %v999_v47 }
 0x773   :  { %vm806_vm8 = vmor %vm804_vm7, %vm805_vm6 }
 0x774   :  { %v801_v51 = vsub.f32 1.0, %v800_v48 }
 0x776   :  { %v802_v52 = vmul.f32 %v999_v47, %v801_v51 }
 0x778   :  { %v803_v54 = vadd.f32 %v999_v47, %v802_v52 }
 0x77a   :  { %v807_v56 = vsel %vm806_vm8, %v999_v47, %v803_v54 }
 0x77b   :  { %v812_v57 = vsel %vm809_vm9, %v811_v55, %v807_v56 }
 0x77c   :  { %v815_v58 = vmul.f32 %v812_v57, %v750_v32 }
 0x77e   :  { %v817_v60 = vmul.f32 %v815_v58, %v773_v59 }
 0x780   :  { %853 = vmatmul.f32.gmra.mxu2 %v817_v60 }
 0x7f2   :  { %v851_v61 = vpop.f32.mrf.mxu2 }
 0x7f3   :  { %v857_v1 = vadd.f32 %v851_v61, %v1388_v27 }
 0x803   :  { %v854_v62 = vpop.f32.mrf.mxu2 }
 0x804   :  { %v858_v63 = vadd.f32 %v854_v62, %v1394_v31 }
 0x806   :  { %860 = vrot.lane.b32.xlu1 %v858_v63, %s1137_s7 }
 0x878   :  { %v861_v3 = vpop.permute.xlu1 %860 }
 0x879   :  { %v863_v28 = vsel %vm101_vm0, %v857_v1, %v861_v3 }
 0x87a   :  { %864 = vst [vmem:[#allocation10] sm:$0xff] %v863_v28 }
 0x87b   :  { %875 = dma.vmem_to_hbm [thread:$0]  %s871_s16, 128, %s873_s20, [#allocation4]  }
 0x87c   :  { %1126 = dma.done.wait [#allocation4], 128  }
 0x87d   :  { %1127 = vsyncadd [#allocation4], 4294967168 }
 0x87e   :  { %880 = vsyncpa [#allocation3], 1 }
 0x87f   :  { %881 = vsyncpa [#allocation6], 1 }
 0x880   :  { %882 = vsyncpa [#allocation9], 1 }
 0x881   :  { %883 = vsyncpa [#allocation4], 1 }

</bundles_post_ra>
